<compile_context>
chip_gen: v7x
topology: tpu7x:2x2x1
jax: 0.10.0
libtpu: 0.0.40
codegen_flags: <defaults>
</compile_context>

<pallas_src>
import functools

import jax
import jax.numpy as jnp
from jax.experimental import pallas as pl
from jax.experimental.pallas import tpu as pltpu

LANE = 128
MAX_BLOCK_ROWS = 2048  # 2048 x 128 x 4B = 1 MiB per f32 VMEM buffer


# ---------------------------------------------------------------------------
# Shared math (f32 in, f32 out).  Noise terms algebraically fused:
#   noise_one + noise_zero == noise * (center - hard)
# ---------------------------------------------------------------------------
def _cns_math(x, u, stddev, alpha, log):
    noise = u * stddev
    hard = jnp.clip(x, 1.0 - alpha, 1.0)                 # F.hardtanh(x, 1-a, 1)
    center = jnp.where((x > 0.0) & (x < alpha), x, 0.0)  # center_function(x,0,a)
    out = jnp.clip(x + noise * (center - hard), 0.0, 1.0)
    if log:
        out = jnp.log(out)
    return out


# ---------------------------------------------------------------------------
# Kernels
# ---------------------------------------------------------------------------
def _rng_kernel(seed_ref, x_ref, o_ref, *, stddev, alpha, log):
    # Per-block reseed -> deterministic regardless of grid-iteration order,
    # so the grid axis can be marked "parallel" (v7x megacore sharding).
    pltpu.prng_seed(seed_ref[0] + pl.program_id(0))

    x = x_ref[...].astype(jnp.float32)
    if log:
        x = jnp.exp(x)

    # Raw 32-bit random bits -> U[0,1) with 23-bit precision (mantissa trick:
    # build float bits in [1,2) and subtract 1; avoids int->float converts).
    bits = pltpu.bitcast(pltpu.prng_random_bits(x_ref.shape), jnp.uint32)
    mant = (bits >> 9) | jnp.uint32(0x3F800000)
    u = pltpu.bitcast(mant, jnp.float32) - 1.0

    o_ref[...] = _cns_math(x, u, stddev, alpha, log).astype(o_ref.dtype)


def _unoise_kernel(x_ref, u_ref, o_ref, *, stddev, alpha, log):
    x = x_ref[...].astype(jnp.float32)
    u = u_ref[...].astype(jnp.float32)
    if log:
        x = jnp.exp(x)
    o_ref[...] = _cns_math(x, u, stddev, alpha, log).astype(o_ref.dtype)


# ---------------------------------------------------------------------------
# Layout helpers: flatten to (rows, 128); pad only the ragged lane tail.
# ---------------------------------------------------------------------------
def _to_2d(a):
    n = a.size
    flat = a.reshape(-1)
    tail = (-n) % LANE
    if tail:
        flat = jnp.pad(flat, (0, tail))
    rows = (n + tail) // LANE
    return flat.reshape(rows, LANE), rows, tail


def _from_2d(out2d, orig_shape, n, tail):
    out = out2d.reshape(-1)
    if tail:
        out = out[:n]
    return out.reshape(orig_shape)


def _block_rows(rows, dtype):
    # Sublane alignment: 8 for 4-byte dtypes, 16 for bf16/f16, 32 for 1-byte.
    itemsize = jnp.dtype(dtype).itemsize
    row_align = 8 * max(1, 4 // itemsize)
    padded = ((rows + row_align - 1) // row_align) * row_align
    return min(MAX_BLOCK_ROWS, padded)


# ---------------------------------------------------------------------------
# pallas_call wrappers
# ---------------------------------------------------------------------------
def _call_rng(x2d, seed, block_rows, dtype, stddev, alpha, log):
    rows = x2d.shape[0]
    kernel = functools.partial(
        _rng_kernel, stddev=float(stddev), alpha=float(alpha), log=bool(log))
    return pl.pallas_call(
        kernel,
        out_shape=jax.ShapeDtypeStruct((rows, LANE), dtype),
        grid_spec=pltpu.PrefetchScalarGridSpec(
            num_scalar_prefetch=1,                         # seed lands in SMEM
            grid=(pl.cdiv(rows, block_rows),),
            in_specs=[pl.BlockSpec((block_rows, LANE), lambda i, _s: (i, 0))],
            out_specs=pl.BlockSpec((block_rows, LANE), lambda i, _s: (i, 0))),
        compiler_params=pltpu.CompilerParams(
            dimension_semantics=("parallel",)),
    )(seed, x2d)


def _call_unoise(x2d, u2d, block_rows, dtype, stddev, alpha, log):
    rows = x2d.shape[0]
    kernel = functools.partial(
        _unoise_kernel, stddev=float(stddev), alpha=float(alpha), log=bool(log))
    return pl.pallas_call(
        kernel,
        out_shape=jax.ShapeDtypeStruct((rows, LANE), dtype),
        grid=(pl.cdiv(rows, block_rows),),
        in_specs=[pl.BlockSpec((block_rows, LANE), lambda i: (i, 0)),
                  pl.BlockSpec((block_rows, LANE), lambda i: (i, 0))],
        out_specs=pl.BlockSpec((block_rows, LANE), lambda i: (i, 0)),
        compiler_params=pltpu.CompilerParams(
            dimension_semantics=("parallel",)),
    )(x2d, u2d)


# ---------------------------------------------------------------------------
# Public API
# ---------------------------------------------------------------------------
def clipped_noise_softmax_with_uniform(x, u, *, stddev=1.0, alpha=0.1, log=False):
    """Deterministic variant: caller supplies the U[0,1) noise tensor `u`."""
    orig_shape, n, dtype = x.shape, x.size, x.dtype
    x2d, rows, tail = _to_2d(x)
    u2d, _, _ = _to_2d(u.astype(dtype))
    block_rows = _block_rows(rows, dtype)
    out2d = _call_unoise(x2d, u2d, block_rows, dtype, stddev, alpha, log)
    return _from_2d(out2d, orig_shape, n, tail)


def clipped_noise_softmax(x, key=None, *, stddev=1.0, alpha=0.1, log=False,
                          training=True):
    """Pallas implementation of ClippedNoiseSoftmax.forward."""
    if not training:
        return x  # eval mode is the identity

    if key is None:
        key = jax.random.PRNGKey(0)

    orig_shape, n, dtype = x.shape, x.size, x.dtype
    x2d, rows, tail = _to_2d(x)
    block_rows = _block_rows(rows, dtype)

    try:
        # Fast path: on-chip PRNG, no uniform tensor materialized in HBM.
        seed = jax.random.randint(key, (1,), minval=0,
                                  maxval=jnp.iinfo(jnp.int32).max,
                                  dtype=jnp.int32)
        out2d = _call_rng(x2d, seed, block_rows, dtype, stddev, alpha, log)
        out2d = jax.block_until_ready(out2d)
    except Exception:
        # TODO(synk): fallback for environments where pltpu.prng_random_bits
        # does not lower (e.g. interpret mode); streams wrapper-side noise.
        u = jax.random.uniform(key, orig_shape, dtype=jnp.float32).astype(dtype)
        u2d, _, _ = _to_2d(u)
        out2d = _call_unoise(x2d, u2d, block_rows, dtype, stddev, alpha, log)

    return _from_2d(out2d, orig_shape, n, tail)


if __name__ == "__main__":
    # The module sits after a Softmax layer, so feed it softmax'd values.
    key = jax.random.PRNGKey(0)
    k_x, k_noise = jax.random.split(key)
    logits = jax.random.normal(k_x, (2, 4, 16, 16), dtype=jnp.float32)
    x = jax.nn.softmax(logits, axis=1)  # NCHW, softmax over channels

    # --- main (in-kernel PRNG) path: property-based checks --------------------
    out = clipped_noise_softmax(x, k_noise, stddev=1.0, alpha=0.1, log=False,
                                training=True)
    out = jax.block_until_ready(out)
    assert out.shape == x.shape and out.dtype == x.dtype
    assert bool(jnp.all(jnp.isfinite(out)))
    assert bool(jnp.all((out >= 0.0) & (out <= 1.0)))
    # For alpha <= 0.5 the noise term is <= 0, so output never exceeds input.
    assert bool(jnp.all(out <= x + 1e-6))
    # Noise really was applied (would fail if the PRNG produced all zeros).
    assert float(jnp.mean(x - out)) > 1e-2

    # --- exact math check via the deterministic-noise kernel ------------------
    u_ref = jax.random.uniform(k_noise, x.shape, dtype=x.dtype)
    out_det = clipped_noise_softmax_with_uniform(x, u_ref, stddev=1.0,
                                                 alpha=0.1, log=False)
    noise = u_ref * 1.0
    hard = jnp.clip(x, 0.9, 1.0)
    center = jnp.where((x > 0.0) & (x < 0.1), x, jnp.zeros_like(x))
    ref = jnp.clip(x + noise * (center - hard), 0.0, 1.0)
    assert bool(jnp.allclose(out_det, ref, atol=1e-6))

    # --- eval path is the identity --------------------------------------------
    out_eval = clipped_noise_softmax(x, k_noise, training=False)
    assert bool(jnp.allclose(out_eval, x))

    print("KERNEL_OK")
</pallas_src>

<mosaic_0001>
module attributes {stable_mosaic.version = 11 : i64} {
  func.func @_rng_kernel(%arg0: i32, %arg1: memref<1xi32, #tpu.memory_space<smem>>, %arg2: memref<16x128xf32, #tpu.memory_space<vmem>>, %arg3: memref<16x128xf32, #tpu.memory_space<vmem>>) attributes {dimension_semantics = [#tpu.dimension_semantics<parallel>], iteration_bounds = array<i64: 1>, scalar_prefetch = 1 : i64, scratch_operands = 0 : i64, tpu.core_type = #tpu.core_type<tc>, window_params = [{transform_indices = @transform_0, window_bounds = array<i64: 16, 128>}, {transform_indices = @transform_1, window_bounds = array<i64: 16, 128>}]} {
    %c0 = arith.constant 0 : index
    %0 = memref.load %arg1[%c0] : memref<1xi32, #tpu.memory_space<smem>>
    %1 = arith.addi %0, %arg0 : i32
    "tpu.prng_set_seed_32"(%1) : (i32) -> ()
    %c0_0 = arith.constant 0 : index
    %c0_1 = arith.constant 0 : index
    %2 = vector.load %arg2[%c0_0, %c0_1] : memref<16x128xf32, #tpu.memory_space<vmem>>, vector<16x128xf32>
    %3 = "tpu.prng_random_bits"() : () -> vector<16x128xi32>
    %4 = tpu.bitcast %3 : vector<16x128xi32> -> vector<16x128xi32>
    %c9_i32 = arith.constant 9 : i32
    %5 = vector.broadcast %c9_i32 : i32 to vector<16x128xi32>
    %6 = arith.shrui %4, %5 : vector<16x128xi32>
    %c1065353216_i32 = arith.constant 1065353216 : i32
    %7 = vector.broadcast %c1065353216_i32 : i32 to vector<16x128xi32>
    %8 = arith.ori %6, %7 : vector<16x128xi32>
    %9 = tpu.bitcast %8 : vector<16x128xi32> -> vector<16x128xf32>
    %cst = arith.constant 1.000000e+00 : f32
    %10 = vector.broadcast %cst : f32 to vector<16x128xf32>
    %11 = arith.subf %9, %10 : vector<16x128xf32>
    %cst_2 = arith.constant 1.000000e+00 : f32
    %12 = vector.broadcast %cst_2 : f32 to vector<16x128xf32>
    %13 = arith.mulf %11, %12 : vector<16x128xf32>
    %cst_3 = arith.constant 0.899999976 : f32
    %cst_4 = arith.constant 1.000000e+00 : f32
    %14 = vector.broadcast %cst_3 : f32 to vector<16x128xf32>
    %15 = arith.maximumf %14, %2 : vector<16x128xf32>
    %16 = vector.broadcast %cst_4 : f32 to vector<16x128xf32>
    %17 = arith.minimumf %16, %15 : vector<16x128xf32>
    %cst_5 = arith.constant 0.000000e+00 : f32
    %18 = vector.broadcast %cst_5 : f32 to vector<16x128xf32>
    %19 = arith.cmpf ogt, %2, %18 : vector<16x128xf32>
    %cst_6 = arith.constant 1.000000e-01 : f32
    %20 = vector.broadcast %cst_6 : f32 to vector<16x128xf32>
    %21 = arith.cmpf olt, %2, %20 : vector<16x128xf32>
    %22 = arith.andi %19, %21 : vector<16x128xi1>
    %cst_7 = arith.constant 0.000000e+00 : f32
    %23 = vector.broadcast %cst_7 : f32 to vector<16x128xf32>
    %24 = arith.select %22, %2, %23 : vector<16x128xi1>, vector<16x128xf32>
    %25 = arith.subf %24, %17 : vector<16x128xf32>
    %26 = arith.mulf %13, %25 : vector<16x128xf32>
    %27 = arith.addf %2, %26 : vector<16x128xf32>
    %cst_8 = arith.constant 0.000000e+00 : f32
    %cst_9 = arith.constant 1.000000e+00 : f32
    %28 = vector.broadcast %cst_8 : f32 to vector<16x128xf32>
    %29 = arith.maximumf %28, %27 : vector<16x128xf32>
    %30 = vector.broadcast %cst_9 : f32 to vector<16x128xf32>
    %31 = arith.minimumf %30, %29 : vector<16x128xf32>
    %c0_10 = arith.constant 0 : index
    %c0_11 = arith.constant 0 : index
    %32 = vector.load %arg3[%c0_10, %c0_11] : memref<16x128xf32, #tpu.memory_space<vmem>>, vector<16x128xf32>
    tpu.vector_store %arg3[%c0_10, %c0_11], %31 {strides = array<i32>} : memref<16x128xf32, #tpu.memory_space<vmem>>, vector<16x128xf32>,
    return
  }
  func.func @transform_0(%arg0: i32, %arg1: memref<1xi32, #tpu.memory_space<smem>>) -> (i32, i32) {
    %c0_i32 = arith.constant 0 : i32
    %c0_i32_0 = arith.constant 0 : i32
    return %arg0, %c0_i32 : i32, i32
  }
  func.func @transform_1(%arg0: i32, %arg1: memref<1xi32, #tpu.memory_space<smem>>) -> (i32, i32) {
    %c0_i32 = arith.constant 0 : i32
    %c0_i32_0 = arith.constant 0 : i32
    return %arg0, %c0_i32 : i32, i32
  }
}

module attributes {stable_mosaic.version = 11 : i64} {
  func.func @_unoise_kernel(%arg0: i32, %arg1: memref<16x128xf32, #tpu.memory_space<vmem>>, %arg2: memref<16x128xf32, #tpu.memory_space<vmem>>, %arg3: memref<16x128xf32, #tpu.memory_space<vmem>>) attributes {dimension_semantics = [#tpu.dimension_semantics<parallel>], iteration_bounds = array<i64: 1>, scalar_prefetch = 0 : i64, scratch_operands = 0 : i64, tpu.core_type = #tpu.core_type<tc>, window_params = [{transform_indices = @transform_0, window_bounds = array<i64: 16, 128>}, {transform_indices = @transform_1, window_bounds = array<i64: 16, 128>}, {transform_indices = @transform_2, window_bounds = array<i64: 16, 128>}]} {
    %c0 = arith.constant 0 : index
    %c0_0 = arith.constant 0 : index
    %0 = vector.load %arg1[%c0, %c0_0] : memref<16x128xf32, #tpu.memory_space<vmem>>, vector<16x128xf32>
    %c0_1 = arith.constant 0 : index
    %c0_2 = arith.constant 0 : index
    %1 = vector.load %arg2[%c0_1, %c0_2] : memref<16x128xf32, #tpu.memory_space<vmem>>, vector<16x128xf32>
    %cst = arith.constant 1.000000e+00 : f32
    %2 = vector.broadcast %cst : f32 to vector<16x128xf32>
    %3 = arith.mulf %1, %2 : vector<16x128xf32>
    %cst_3 = arith.constant 0.899999976 : f32
    %cst_4 = arith.constant 1.000000e+00 : f32
    %4 = vector.broadcast %cst_3 : f32 to vector<16x128xf32>
    %5 = arith.maximumf %4, %0 : vector<16x128xf32>
    %6 = vector.broadcast %cst_4 : f32 to vector<16x128xf32>
    %7 = arith.minimumf %6, %5 : vector<16x128xf32>
    %cst_5 = arith.constant 0.000000e+00 : f32
    %8 = vector.broadcast %cst_5 : f32 to vector<16x128xf32>
    %9 = arith.cmpf ogt, %0, %8 : vector<16x128xf32>
    %cst_6 = arith.constant 1.000000e-01 : f32
    %10 = vector.broadcast %cst_6 : f32 to vector<16x128xf32>
    %11 = arith.cmpf olt, %0, %10 : vector<16x128xf32>
    %12 = arith.andi %9, %11 : vector<16x128xi1>
    %cst_7 = arith.constant 0.000000e+00 : f32
    %13 = vector.broadcast %cst_7 : f32 to vector<16x128xf32>
    %14 = arith.select %12, %0, %13 : vector<16x128xi1>, vector<16x128xf32>
    %15 = arith.subf %14, %7 : vector<16x128xf32>
    %16 = arith.mulf %3, %15 : vector<16x128xf32>
    %17 = arith.addf %0, %16 : vector<16x128xf32>
    %cst_8 = arith.constant 0.000000e+00 : f32
    %cst_9 = arith.constant 1.000000e+00 : f32
    %18 = vector.broadcast %cst_8 : f32 to vector<16x128xf32>
    %19 = arith.maximumf %18, %17 : vector<16x128xf32>
    %20 = vector.broadcast %cst_9 : f32 to vector<16x128xf32>
    %21 = arith.minimumf %20, %19 : vector<16x128xf32>
    %c0_10 = arith.constant 0 : index
    %c0_11 = arith.constant 0 : index
    %22 = vector.load %arg3[%c0_10, %c0_11] : memref<16x128xf32, #tpu.memory_space<vmem>>, vector<16x128xf32>
    tpu.vector_store %arg3[%c0_10, %c0_11], %21 {strides = array<i32>} : memref<16x128xf32, #tpu.memory_space<vmem>>, vector<16x128xf32>,
    return
  }
  func.func @transform_0(%arg0: i32) -> (i32, i32) {
    %c0_i32 = arith.constant 0 : i32
    %c0_i32_0 = arith.constant 0 : i32
    return %arg0, %c0_i32 : i32, i32
  }
  func.func @transform_1(%arg0: i32) -> (i32, i32) {
    %c0_i32 = arith.constant 0 : i32
    %c0_i32_0 = arith.constant 0 : i32
    return %arg0, %c0_i32 : i32, i32
  }
  func.func @transform_2(%arg0: i32) -> (i32, i32) {
    %c0_i32 = arith.constant 0 : i32
    %c0_i32_0 = arith.constant 0 : i32
    return %arg0, %c0_i32 : i32, i32
  }
}

</mosaic_0001>

<bundles_post_ra>
// kernel: tpu_custom_call.1
= control target key start
LH: loop header
LB: loop body
LE: loop exit
PB: predicated region body
PF: predicated region fallthrough
CT: control target
= control target key end

     0   :  { %8 = vsyncpa [#allocation5], 0  ;;  %s325_s0 = inlined_call_operand.<no memory space> [shape: s32[1], index: 0, kind: input, shape index: {}]   ;;  %s326_s1 = inlined_call_operand.hbm [shape: f32[16,128], index: 1, kind: input, shape index: {}]   ;;  %s327_s2 = inlined_call_operand.hbm [shape: f32[16,128], index: 2, kind: output, shape index: {}]  }
   0x1   :  { %9 = vsyncpa [#allocation6], 0  ;;  %s256_s9 = smov [#allocation4]   ;;  %s208_s13 = scalar_lea.hbm %s326_s1, 256 }
   0x2   :  { %s15_s10 = sshll.u32 %s256_s9, 4  ;;  %p209_p0 = scmp.ne.s32.totalorder %s326_s1, %s208_s13  ;;  %s16_s10 = int_to_ptr.vmem [resolvable:$true] %s15_s10 }
   0x3   :  { %p212_p1 = scmp.lt.u32.totalorder %s208_s13, %s326_s1 }
   0x5   :  { %p214_p2 = pnand %p212_p1, %p209_p0 }
   0x7   :  { %217 = shalt.err (!%p214_p2)
}
   0x8   :  { %s218_s18 = scalar_lea.vmem %s16_s10, 256  ;;  %p223_p4 = scmp.lt.s32.totalorder %s16_s10, %s16_s10 }
   0x9   :  { %p219_p3 = scmp.ne.s32.totalorder %s16_s10, %s218_s18  ;;  %p224_p5 = scmp.lt.s32.totalorder %s218_s18, %s218_s18 }
   0xb   :  { %p225_p6 = por %p224_p5, %p223_p4 }
   0xd   :  { %p226_p7 = pnand %p225_p6, %p219_p3 }
   0xf   :  { %229 = shalt.err (!%p226_p7)
}
  0x10   :  { %s257_s19 = smov 128   ;;  %s258_s20 = smov 8  }
  0x11   :  { %21 = dma.hbm_to_vmem [thread:$0]  %s326_s1, 256, %s16_s10, [#allocation5], %s257_s19, %s257_s19, %s258_s20  }
  0x12   :  { %252 = dma.done.wait [#allocation5], 256  }
  0x13   :  { %253 = vsyncadd [#allocation5], 4294967040  ;;  %v27_v0 = vlaneseq  ;;  %v293_v1 = vstv %s325_s0  ;;  %s259_s0 = smov [#allocation7]  }
  0x14   :  { %v29_v17 = vxor.u32 %v293_v1, %v293_v1  ;;  %s190_s1 = sshll.u32 %s259_s0, 4  ;;  %s191_s1 = int_to_ptr.vmem [resolvable:$true] %s190_s1 }
  0x15   :  { %v31_v2 = vadd.s32 %v293_v1, %v27_v0  ;;  %s230_s25 = scalar_lea.vmem %s191_s1, 256  ;;  %p235_p9 = scmp.lt.s32.totalorder %s191_s1, %s191_s1 }
  0x16   :  { %v298_v22 = vxor.u32 466688986, %v29_v17  ;;  %p231_p8 = scmp.ne.s32.totalorder %s191_s1, %s230_s25  ;;  %p236_p10 = scmp.lt.s32.totalorder %s230_s25, %s230_s25 }
  0x17   :  { %v32_v3 = vadd.s32 %v31_v2, %v31_v2  ;;  %v33_v4 = vshll.u32 %v31_v2, 13  ;;  %v34_v5 = vshrl.u32 %v31_v2, 19 }
  0x18   :  { %p237_p11 = por %p236_p10, %p235_p9 }
  0x19   :  { %v35_v6 = vor.u32 %v34_v5, %v33_v4 }
  0x1a   :  { %p238_p12 = pnand %p237_p11, %p231_p8 }
  0x1b   :  { %v36_v7 = vxor.u32 %v35_v6, %v32_v3 }
  0x1d   :  { %v37_v8 = vadd.s32 %v36_v7, %v32_v3  ;;  %v38_v9 = vshll.u32 %v36_v7, 15  ;;  %v39_v10 = vshrl.u32 %v36_v7, 17 }
  0x1f   :  { %v40_v11 = vor.u32 %v39_v10, %v38_v9 }
  0x21   :  { %v41_v12 = vxor.u32 %v40_v11, %v37_v8 }
  0x23   :  { %v42_v13 = vadd.s32 %v41_v12, %v37_v8  ;;  %v43_v14 = vshll.u32 %v41_v12, 26  ;;  %v44_v15 = vshrl.u32 %v41_v12, 6 }
  0x25   :  { %v45_v16 = vor.u32 %v44_v15, %v43_v14 }
  0x27   :  { %v46_v18 = vxor.u32 %v45_v16, %v42_v13 }
  0x29   :  { %v47_v19 = vadd.s32 %v46_v18, %v42_v13  ;;  %v48_v20 = vshll.u32 %v46_v18, 6  ;;  %v49_v21 = vshrl.u32 %v46_v18, 26 }
  0x2b   :  { %v50_v23 = vor.u32 %v49_v21, %v48_v20  ;;  %v52_v25 = vadd.s32 %v47_v19, %v293_v1 }
  0x2d   :  { %v51_v24 = vxor.u32 %v50_v23, %v47_v19 }
  0x2f   :  { %v53_v26 = vadd.s32 %v51_v24, %v298_v22 }
  0x31   :  { %v54_v27 = vadd.s32 1, %v53_v26 }
  0x33   :  { %v55_v28 = vadd.s32 %v54_v27, %v52_v25  ;;  %v56_v29 = vshll.u32 %v54_v27, 17  ;;  %v57_v30 = vshrl.u32 %v54_v27, 15 }
  0x35   :  { %v58_v31 = vor.u32 %v57_v30, %v56_v29 }
  0x37   :  { %v59_v32 = vxor.u32 %v58_v31, %v55_v28 }
  0x39   :  { %v60_v33 = vadd.s32 %v59_v32, %v55_v28  ;;  %v61_v34 = vshll.u32 %v59_v32, 29  ;;  %v62_v35 = vshrl.u32 %v59_v32, 3 }
  0x3b   :  { %v63_v36 = vor.u32 %v62_v35, %v61_v34 }
  0x3d   :  { %v64_v37 = vxor.u32 %v63_v36, %v60_v33 }
  0x3f   :  { %v65_v38 = vadd.s32 %v64_v37, %v60_v33  ;;  %v66_v39 = vshll.u32 %v64_v37, 16  ;;  %v67_v40 = vshrl.u32 %v64_v37, 16 }
  0x41   :  { %v68_v41 = vor.u32 %v67_v40, %v66_v39 }
  0x43   :  { %v69_v42 = vxor.u32 %v68_v41, %v65_v38 }
  0x45   :  { %v70_v43 = vadd.s32 %v69_v42, %v65_v38  ;;  %v71_v44 = vshll.u32 %v69_v42, 24  ;;  %v72_v45 = vshrl.u32 %v69_v42, 8 }
  0x47   :  { %v73_v46 = vor.u32 %v72_v45, %v71_v44  ;;  %v75_v48 = vadd.s32 %v70_v43, %v298_v22 }
  0x49   :  { %v74_v47 = vxor.u32 %v73_v46, %v70_v43 }
  0x4b   :  { %v76_v49 = vadd.s32 %v74_v47, %v293_v1 }
  0x4d   :  { %v77_v50 = vadd.s32 2, %v76_v49 }
  0x4f   :  { %v78_v51 = vadd.s32 %v77_v50, %v75_v48  ;;  %v79_v52 = vshll.u32 %v77_v50, 13  ;;  %v80_v53 = vshrl.u32 %v77_v50, 19 }
  0x51   :  { %v81_v54 = vor.u32 %v80_v53, %v79_v52 }
  0x53   :  { %v82_v55 = vxor.u32 %v81_v54, %v78_v51 }
  0x55   :  { %v83_v56 = vadd.s32 %v82_v55, %v78_v51  ;;  %v84_v57 = vshll.u32 %v82_v55, 15  ;;  %v85_v58 = vshrl.u32 %v82_v55, 17  ;;  %v149_v55 = vld [vmem:[#allocation4] sm:$0xff] }
  0x56   :  { %vm165_vm0 = vcmp.gt.f32.partialorder %v149_v55, 0.0  ;;  %vm167_vm1 = vcmp.lt.f32.partialorder %v149_v55, 0.1 }
  0x57   :  { %v86_v59 = vor.u32 %v85_v58, %v84_v57  ;;  %vm169_vm4 = vmand %vm165_vm0, %vm167_vm1 }
  0x59   :  { %v87_v60 = vxor.u32 %v86_v59, %v83_v56 }
  0x5b   :  { %v88_v61 = vadd.s32 %v87_v60, %v83_v56  ;;  %v89_v62 = vshll.u32 %v87_v60, 26  ;;  %v90_v63 = vshrl.u32 %v87_v60, 6  ;;  %v150_v56 = vld [vmem:[#allocation4 + $0x8] sm:$0xff]  ;;  %v161_v60 = vmax.f32 %v149_v55, 0.9 }
  0x5c   :  { %vm166_vm2 = vcmp.gt.f32.partialorder %v150_v56, 0.0  ;;  %vm168_vm3 = vcmp.lt.f32.partialorder %v150_v56, 0.1 }
  0x5d   :  { %v91_v0 = vor.u32 %v90_v63, %v89_v62  ;;  %vm170_vm5 = vmand %vm166_vm2, %vm168_vm3  ;;  %v163_v63 = vmin.f32 %v161_v60, 1.0 }
  0x5f   :  { %v92_v2 = vxor.u32 %v91_v0, %v88_v61 }
  0x61   :  { %v93_v3 = vadd.s32 %v92_v2, %v88_v61  ;;  %v94_v4 = vshll.u32 %v92_v2, 6  ;;  %v95_v5 = vshrl.u32 %v92_v2, 26  ;;  %v162_v61 = vmax.f32 %v150_v56, 0.9 }
  0x62   :  { %v171_v2 = vsel %vm169_vm4, %v149_v55, 0.0 }
  0x63   :  { %v96_v6 = vor.u32 %v95_v5, %v94_v4  ;;  %v98_v8 = vadd.s32 %v93_v3, %v293_v1 }
  0x65   :  { %v97_v7 = vxor.u32 %v96_v6, %v93_v3  ;;  %v164_v3 = vmin.f32 %v162_v61, 1.0 }
  0x67   :  { %v99_v9 = vadd.s32 %v97_v7, %v293_v1  ;;  %v173_v7 = vsub.f32 %v171_v2, %v163_v63 }
  0x69   :  { %v100_v10 = vadd.s32 3, %v99_v9 }
  0x6b   :  { %v101_v11 = vadd.s32 %v100_v10, %v98_v8  ;;  %v102_v12 = vshll.u32 %v100_v10, 17  ;;  %v103_v13 = vshrl.u32 %v100_v10, 15 }
  0x6d   :  { %v104_v14 = vor.u32 %v103_v13, %v102_v12 }
  0x6f   :  { %v105_v15 = vxor.u32 %v104_v14, %v101_v11 }
  0x71   :  { %v106_v16 = vadd.s32 %v105_v15, %v101_v11  ;;  %v107_v17 = vshll.u32 %v105_v15, 29  ;;  %v108_v18 = vshrl.u32 %v105_v15, 3 }
  0x73   :  { %v109_v19 = vor.u32 %v108_v18, %v107_v17 }
  0x75   :  { %v110_v20 = vxor.u32 %v109_v19, %v106_v16 }
  0x77   :  { %v111_v21 = vadd.s32 %v110_v20, %v106_v16  ;;  %v112_v23 = vshll.u32 %v110_v20, 16  ;;  %v113_v24 = vshrl.u32 %v110_v20, 16 }
  0x79   :  { %v114_v25 = vor.u32 %v113_v24, %v112_v23 }
  0x7b   :  { %v115_v26 = vxor.u32 %v114_v25, %v111_v21 }
  0x7d   :  { %v116_v27 = vadd.s32 %v115_v26, %v111_v21  ;;  %v117_v28 = vshll.u32 %v115_v26, 24  ;;  %v118_v29 = vshrl.u32 %v115_v26, 8 }
  0x7f   :  { %v119_v30 = vor.u32 %v118_v29, %v117_v28  ;;  %v121_v32 = vadd.s32 %v116_v27, %v293_v1 }
  0x81   :  { %v120_v31 = vxor.u32 %v119_v30, %v116_v27 }
  0x83   :  { %v122_v33 = vadd.s32 %v120_v31, %v298_v22 }
  0x85   :  { %v123_v34 = vadd.s32 4, %v122_v33 }
  0x87   :  { %v124_v35 = vadd.s32 %v123_v34, %v121_v32  ;;  %v125_v36 = vshll.u32 %v123_v34, 13  ;;  %v126_v37 = vshrl.u32 %v123_v34, 19 }
  0x89   :  { %v127_v38 = vor.u32 %v126_v37, %v125_v36 }
  0x8b   :  { %v128_v39 = vxor.u32 %v127_v38, %v124_v35 }
  0x8d   :  { %v129_v40 = vadd.s32 %v128_v39, %v124_v35  ;;  %v130_v41 = vshll.u32 %v128_v39, 15  ;;  %v131_v42 = vshrl.u32 %v128_v39, 17 }
  0x8f   :  { %v132_v43 = vor.u32 %v131_v42, %v130_v41 }
  0x91   :  { %v133_v44 = vxor.u32 %v132_v43, %v129_v40 }
  0x93   :  { %v134_v45 = vadd.s32 %v133_v44, %v129_v40  ;;  %v135_v46 = vshll.u32 %v133_v44, 26  ;;  %v136_v47 = vshrl.u32 %v133_v44, 6 }
  0x95   :  { %v137_v48 = vor.u32 %v136_v47, %v135_v46 }
  0x97   :  { %v138_v49 = vxor.u32 %v137_v48, %v134_v45 }
  0x99   :  { %v139_v50 = vadd.s32 %v138_v49, %v134_v45  ;;  %v140_v51 = vshll.u32 %v138_v49, 6  ;;  %v141_v52 = vshrl.u32 %v138_v49, 26 }
  0x9b   :  { %v142_v53 = vor.u32 %v141_v52, %v140_v51  ;;  %v144_v57 = vadd.s32 %v139_v50, %v298_v22  ;;  %v172_v22 = vsel %vm170_vm5, %v150_v56, 0.0 }
  0x9c   :  { %v174_v9 = vsub.f32 %v172_v22, %v164_v3 }
  0x9d   :  { %v143_v54 = vxor.u32 %v142_v53, %v139_v50 }
  0x9f   :  { %v145_v58 = vadd.s32 %v143_v54, %v293_v1 }
  0xa1   :  { %v146_v59 = vadd.s32 5, %v145_v58 }
  0xa3   :  { %v147_v62 = vxor.u32 %v146_v59, %v144_v57 }
  0xa5   :  { %148 = set.rngseed %v147_v62 }
  0xa6   :  { %v151_v0 = vrng }
  0xa7   :  { %v153_v4 = vshrl.u32 %v151_v0, 9  ;;  %v152_v5 = vrng }
  0xa8   :  { %v154_v6 = vshrl.u32 %v152_v5, 9 }
  0xa9   :  { %v155_v1 = vor.u32 1065353216, %v153_v4 }
  0xaa   :  { %v156_v8 = vor.u32 1065353216, %v154_v6 }
  0xab   :  { %v202_v10 = vadd.f32 -1.0, %v155_v1 }
  0xac   :  { %v203_v11 = vadd.f32 -1.0, %v156_v8 }
  0xad   :  { %v175_v12 = vmul.f32 %v202_v10, %v173_v7 }
  0xae   :  { %v176_v13 = vmul.f32 %v203_v11, %v174_v9 }
  0xaf   :  { %v177_v14 = vadd.f32 %v175_v12, %v149_v55 }
  0xb0   :  { %v178_v15 = vadd.f32 %v176_v13, %v150_v56 }
  0xb1   :  { %v179_v16 = vmax.f32 %v177_v14, 0.0 }
  0xb2   :  { %v180_v17 = vmax.f32 %v178_v15, 0.0 }
  0xb3   :  { %v181_v18 = vmin.f32 %v179_v16, 1.0 }
  0xb4   :  { %v182_v19 = vmin.f32 %v180_v17, 1.0 }
  0xb5   :  { %183 = vst [vmem:[#allocation7] sm:$0xff] %v181_v18 }
  0xb6   :  { %184 = vst [vmem:[#allocation7 + $0x8] sm:$0xff] %v182_v19 }
  0xb7   :  { %241 = shalt.err (!%p238_p12)
}
  0xb8   :  { %s242_s28 = scalar_lea.hbm %s327_s2, 256 }
  0xb9   :  { %p243_p13 = scmp.ne.s32.totalorder %s327_s2, %s242_s28  ;;  %p246_p0 = scmp.lt.u32.totalorder %s242_s28, %s327_s2 }
  0xbb   :  { %p248_p1 = pnand %p246_p0, %p243_p13 }
  0xbd   :  { %251 = shalt.err (!%p248_p1)
}
  0xbe   :  { %196 = dma.vmem_to_hbm [thread:$0]  %s191_s1, 256, %s327_s2, [#allocation6], %s257_s19, %s257_s19, %s258_s20  }
  0xbf   :  { %254 = dma.done.wait [#allocation6], 256  }
  0xc0   :  { %255 = vsyncadd [#allocation6], 4294967040 }
  0xc1   :  { %200 = vsyncpa [#allocation5], 1 }
  0xc2   :  { %201 = vsyncpa [#allocation6], 1 }

// kernel: tpu_custom_call.1
= control target key start
LH: loop header
LB: loop body
LE: loop exit
PB: predicated region body
PF: predicated region fallthrough
CT: control target
= control target key end

     0   :  { %7 = vsyncpa [#allocation3], 0  ;;  %s228_s0 = inlined_call_operand.hbm [shape: f32[16,128], index: 0, kind: input, shape index: {}]   ;;  %s229_s1 = inlined_call_operand.hbm [shape: f32[16,128], index: 1, kind: input, shape index: {}]   ;;  %s230_s2 = inlined_call_operand.hbm [shape: f32[16,128], index: 2, kind: output, shape index: {}]  }
   0x1   :  { %8 = vsyncpa [#allocation6], 0 }
   0x2   :  { %9 = vsyncpa [#allocation4], 0  ;;  %s163_s9 = smov [#allocation2]   ;;  %s91_s13 = scalar_lea.hbm %s228_s0, 256 }
   0x3   :  { %s15_s10 = sshll.u32 %s163_s9, 4  ;;  %p92_p0 = scmp.ne.s32.totalorder %s228_s0, %s91_s13  ;;  %s16_s10 = int_to_ptr.vmem [resolvable:$true] %s15_s10 }
   0x4   :  { %p95_p1 = scmp.lt.u32.totalorder %s91_s13, %s228_s0 }
   0x6   :  { %p97_p2 = pnand %p95_p1, %p92_p0 }
   0x8   :  { %100 = shalt.err (!%p97_p2)
}
   0x9   :  { %s101_s18 = scalar_lea.vmem %s16_s10, 256  ;;  %p106_p4 = scmp.lt.s32.totalorder %s16_s10, %s16_s10 }
   0xa   :  { %p102_p3 = scmp.ne.s32.totalorder %s16_s10, %s101_s18  ;;  %p107_p5 = scmp.lt.s32.totalorder %s101_s18, %s101_s18 }
   0xc   :  { %p108_p6 = por %p107_p5, %p106_p4 }
   0xe   :  { %p109_p7 = pnand %p108_p6, %p102_p3 }
  0x10   :  { %112 = shalt.err (!%p109_p7)
}
  0x11   :  { %s164_s19 = smov 128   ;;  %s165_s20 = smov 8  }
  0x12   :  { %21 = dma.hbm_to_vmem [thread:$0]  %s228_s0, 256, %s16_s10, [#allocation3], %s164_s19, %s164_s19, %s165_s20  }
  0x13   :  { %s166_s23 = smov [#allocation5]   ;;  %s113_s27 = scalar_lea.hbm %s229_s1, 256 }
  0x14   :  { %s27_s24 = sshll.u32 %s166_s23, 4  ;;  %p114_p8 = scmp.ne.s32.totalorder %s229_s1, %s113_s27  ;;  %s28_s24 = int_to_ptr.vmem [resolvable:$true] %s27_s24 }
  0x15   :  { %p117_p9 = scmp.lt.u32.totalorder %s113_s27, %s229_s1 }
  0x17   :  { %p119_p10 = pnand %p117_p9, %p114_p8 }
  0x19   :  { %122 = shalt.err (!%p119_p10)
}
  0x1a   :  { %s123_s4 = scalar_lea.vmem %s28_s24, 256  ;;  %p128_p12 = scmp.lt.s32.totalorder %s28_s24, %s28_s24 }
  0x1b   :  { %p124_p11 = scmp.ne.s32.totalorder %s28_s24, %s123_s4  ;;  %p129_p13 = scmp.lt.s32.totalorder %s123_s4, %s123_s4 }
  0x1d   :  { %p130_p0 = por %p129_p13, %p128_p12 }
  0x1f   :  { %p131_p1 = pnand %p130_p0, %p124_p11 }
  0x21   :  { %134 = shalt.err (!%p131_p1)
}
  0x22   :  { %33 = dma.hbm_to_vmem [thread:$0]  %s229_s1, 256, %s28_s24, [#allocation6], %s164_s19, %s164_s19, %s165_s20  }
  0x23   :  { %157 = dma.done.wait [#allocation3], 256  }
  0x24   :  { %158 = vsyncadd [#allocation3], 4294967040 }
  0x25   :  { %159 = dma.done.wait [#allocation6], 256  }
  0x26   :  { %160 = vsyncadd [#allocation6], 4294967040  ;;  %v40_v0 = vld [vmem:[#allocation2] sm:$0xff]  ;;  %v41_v1 = vld [vmem:[#allocation2 + $0x8] sm:$0xff]  ;;  %s167_s1 = smov [#allocation7]  }
  0x27   :  { %v44_v2 = vmax.f32 %v40_v0, 0.9  ;;  %vm48_vm0 = vcmp.gt.f32.partialorder %v40_v0, 0.0  ;;  %vm50_vm1 = vcmp.lt.f32.partialorder %v40_v0, 0.1  ;;  %vm49_vm3 = vcmp.gt.f32.partialorder %v41_v1, 0.0 }
  0x28   :  { %vm52_vm2 = vmand %vm48_vm0, %vm50_vm1  ;;  %v45_v3 = vmax.f32 %v41_v1, 0.9  ;;  %vm51_vm4 = vcmp.lt.f32.partialorder %v41_v1, 0.1  ;;  %v42_v6 = vld [vmem:[#allocation5] sm:$0xff]  ;;  %v43_v10 = vld [vmem:[#allocation5 + $0x8] sm:$0xff] }
  0x29   :  { %v46_v4 = vmin.f32 %v44_v2, 1.0  ;;  %v54_v5 = vsel %vm52_vm2, %v40_v0, 0.0  ;;  %vm53_vm5 = vmand %vm49_vm3, %vm51_vm4  ;;  %s73_s6 = sshll.u32 %s167_s1, 4  ;;  %s74_s6 = int_to_ptr.vmem [resolvable:$true] %s73_s6 }
  0x2a   :  { %v47_v7 = vmin.f32 %v45_v3, 1.0  ;;  %v55_v8 = vsel %vm53_vm5, %v41_v1, 0.0  ;;  %s135_s7 = scalar_lea.vmem %s74_s6, 256  ;;  %p140_p3 = scmp.lt.s32.totalorder %s74_s6, %s74_s6 }
  0x2b   :  { %v56_v9 = vsub.f32 %v54_v5, %v46_v4  ;;  %p136_p2 = scmp.ne.s32.totalorder %s74_s6, %s135_s7  ;;  %p141_p4 = scmp.lt.s32.totalorder %s135_s7, %s135_s7 }
  0x2c   :  { %v57_v11 = vsub.f32 %v55_v8, %v47_v7 }
  0x2d   :  { %v58_v12 = vmul.f32 %v56_v9, %v42_v6  ;;  %p142_p5 = por %p141_p4, %p140_p3 }
  0x2e   :  { %v59_v13 = vmul.f32 %v57_v11, %v43_v10 }
  0x2f   :  { %v60_v14 = vadd.f32 %v58_v12, %v40_v0  ;;  %p143_p6 = pnand %p142_p5, %p136_p2 }
  0x30   :  { %v61_v15 = vadd.f32 %v59_v13, %v41_v1 }
  0x31   :  { %v62_v16 = vmax.f32 %v60_v14, 0.0 }
  0x32   :  { %v63_v17 = vmax.f32 %v61_v15, 0.0 }
  0x33   :  { %v64_v18 = vmin.f32 %v62_v16, 1.0 }
  0x34   :  { %v65_v19 = vmin.f32 %v63_v17, 1.0 }
  0x35   :  { %66 = vst [vmem:[#allocation7] sm:$0xff] %v64_v18 }
  0x36   :  { %67 = vst [vmem:[#allocation7 + $0x8] sm:$0xff] %v65_v19 }
  0x37   :  { %146 = shalt.err (!%p143_p6)
}
  0x38   :  { %s147_s10 = scalar_lea.hbm %s230_s2, 256 }
  0x39   :  { %p148_p7 = scmp.ne.s32.totalorder %s230_s2, %s147_s10  ;;  %p151_p8 = scmp.lt.u32.totalorder %s147_s10, %s230_s2 }
  0x3b   :  { %p153_p9 = pnand %p151_p8, %p148_p7 }
  0x3d   :  { %156 = shalt.err (!%p153_p9)
}
  0x3e   :  { %79 = dma.vmem_to_hbm [thread:$0]  %s74_s6, 256, %s230_s2, [#allocation4], %s164_s19, %s164_s19, %s165_s20  }
  0x3f   :  { %161 = dma.done.wait [#allocation4], 256  }
  0x40   :  { %162 = vsyncadd [#allocation4], 4294967040 }
  0x41   :  { %83 = vsyncpa [#allocation3], 1 }
  0x42   :  { %84 = vsyncpa [#allocation6], 1 }
  0x43   :  { %85 = vsyncpa [#allocation4], 1 }

</bundles_post_ra>
